<compile_context>
chip_gen: v7x
topology: tpu7x:2x2x1
jax: 0.10.0
libtpu: 0.0.40
codegen_flags: <defaults>
</compile_context>

<pallas_src>
import jax
import jax.numpy as jnp
import numpy as np
from jax.experimental import pallas as pl
from jax.experimental.pallas import tpu as pltpu


def _make_kernel(hw: int, t_hw: int, num_k: int, chunked: bool,
                 needs_mask: bool, out_2d: bool):
    """Build the kernel closure for a given spatial size / tiling."""
    inv_hw = 1.0 / float(hw)                   # hoisted reciprocal for the mean
    nchunks = (t_hw // 128) if chunked else 0

    def kernel(x_ref, w1_ref, w2_ref, o_ref, sum_sc, max_sc):
        # x_ref  : (t_b, C, t_hw) slab (C on sublanes, HW on lanes)
        # w1_ref : (Cr, C)  fc1 weight (resident)
        # w2_ref : (C, Cr)  fc2 weight (resident)
        # o_ref  : (t_b, C) or (t_b, C, 1) sigmoid(fc2(relu(fc1(avg)))+fc2(relu(fc1(max))))
        # sum_sc : (t_b, C, lw) f32 running (lane-partial) spatial sum
        # max_sc : (t_b, C, lw) f32 running (lane-partial) spatial max
        k = pl.program_id(1)

        @pl.when(k == 0)
        def _init():
            sum_sc[...] = jnp.zeros(sum_sc.shape, dtype=sum_sc.dtype)
            max_sc[...] = jnp.full(max_sc.shape, -jnp.inf, dtype=max_sc.dtype)

        if chunked:
            def accum(masked, base=0):
                if masked:
                    lane = jax.lax.broadcasted_iota(jnp.int32, (1, 1, 128), 2)

                def add_chunk(start):
                    c = x_ref[:, :, pl.ds(start, 128)].astype(jnp.float32)
                    if masked:
                        valid = (base + start + lane) < hw
                        sum_sc[...] += jnp.where(valid, c, 0.0)
                        max_sc[...] = jnp.maximum(max_sc[...],
                                                  jnp.where(valid, c, -jnp.inf))
                    else:
                        sum_sc[...] += c
                        max_sc[...] = jnp.maximum(max_sc[...], c)

                if nchunks <= 16:            # short: full static unroll (LLO visibility)
                    for j in range(nchunks):
                        add_chunk(j * 128)
                else:                        # long: keep code size bounded
                    def body(j, carry):
                        add_chunk(pl.multiple_of(j * 128, 128))
                        return carry
                    jax.lax.fori_loop(0, nchunks, body, 0)

            if needs_mask:
                last = num_k - 1

                @pl.when(k != last)          # hot path: no mask, pure VALU add/max
                def _full_tiles():
                    accum(masked=False)

                @pl.when(k == last)          # cold path: masked ragged tail
                def _tail_tile():
                    accum(masked=True, base=last * t_hw)
            else:
                accum(masked=False)
        else:
            # Single tile whose width is not a 128-multiple (num_k == 1): direct
            # reduce over the logical extent (Mosaic excludes padded lanes).
            xf = x_ref[...].astype(jnp.float32)
            sum_sc[...] += jnp.sum(xf, axis=-1, keepdims=True)
            max_sc[...] = jnp.maximum(max_sc[...],
                                      jnp.max(xf, axis=-1, keepdims=True))

        @pl.when(k == num_k - 1)
        def _finalize():
            # One cross-lane reduce per batch block (off the hot loop).
            avg = jnp.sum(sum_sc[...], axis=-1) * inv_hw           # (t_b, C)
            mx = jnp.max(max_sc[...], axis=-1)                     # (t_b, C)
            w1 = w1_ref[...].astype(jnp.float32)                   # (Cr, C)
            w2 = w2_ref[...].astype(jnp.float32)                   # (C, Cr)
            dn = (((1,), (1,)), ((), ()))                          # A @ B.T on the MXU
            h = (jnp.maximum(jax.lax.dot_general(
                     avg, w1, dn, preferred_element_type=jnp.float32), 0.0)
                 + jnp.maximum(jax.lax.dot_general(
                     mx, w1, dn, preferred_element_type=jnp.float32), 0.0))   # (t_b, Cr)
            out = jax.lax.dot_general(h, w2, dn,
                                      preferred_element_type=jnp.float32)     # (t_b, C)
            out = jax.nn.sigmoid(out)
            if out_2d:
                o_ref[...] = out.astype(o_ref.dtype)
            else:
                o_ref[...] = out[:, :, None].astype(o_ref.dtype)

    return kernel


def _target_block_bytes() -> int:
    """Per-step x-block byte target, tuned per TPU generation."""
    try:
        vmem = int(pltpu.get_tpu_info().vmem_capacity_bytes)
    except Exception:
        vmem = 128 * 1024 * 1024
    if vmem <= 64 * 1024 * 1024:
        # v7x-like: 3.2 TB/s HBM -> bigger tiles to amortise per-step overhead,
        # still comfortably inside 64 MiB physical VMEM when double-buffered.
        return 6 * 1024 * 1024
    # v5e/v6e: ~2 MiB tiles already put per-step overhead well below DMA time.
    return 2 * 1024 * 1024


def _pick_tiles(B, C, HW, itemsize, target_bytes):
    """Choose (t_b, t_hw): prefer whole images per block (batch blocking); only
    tile the spatial axis when a single image exceeds the target."""
    img_bytes = max(1, C * HW * itemsize)
    if img_bytes <= target_bytes:
        t_b = int(max(1, min(B, target_bytes // img_bytes)))
        if t_b < B and t_b >= 8:
            t_b = (t_b // 8) * 8          # keep lane-dense output blocks sublane-aligned
        return t_b, HW
    t_hw = (target_bytes // max(1, C * itemsize)) // 128 * 128
    t_hw = int(max(128, t_hw))
    return 1, int(min(t_hw, HW))


def channel_attention(x, w1, w2, *, t_b=None, t_hw=None):
    """x: (B, C, H, W). w1: (C//r, C). w2: (C, C//r). Returns (B, C, 1, 1)."""
    B, C, H, W = x.shape
    Cr, C_in = w1.shape
    assert C_in == C and w2.shape == (C, Cr)
    HW = H * W
    x_flat = x.reshape(B, C, HW)
    itemsize = x.dtype.itemsize

    target = _target_block_bytes()
    auto_tb, auto_thw = _pick_tiles(B, C, HW, itemsize, target)
    t_b = auto_tb if t_b is None else int(min(max(1, t_b), B))
    t_hw = auto_thw if t_hw is None else int(t_hw)
    if t_hw >= HW:
        t_hw = HW
    elif t_hw % 128 != 0:
        raise ValueError("t_hw must be a multiple of 128 or cover all of H*W")

    num_k = pl.cdiv(HW, t_hw)
    num_b = pl.cdiv(B, t_b)
    chunked = (t_hw % 128 == 0)
    needs_mask = (HW % t_hw) != 0
    lw = 128 if chunked else 1

    # Lane-dense 2-D output when the (t_b, C) block is sublane-legal; otherwise
    # fall back to a (B, C, 1) output block (trailing single lane).
    out_2d = (t_b == B) or (t_b % 8 == 0)
    if out_2d:
        out_shape = jax.ShapeDtypeStruct((B, C), x.dtype)
        out_spec = pl.BlockSpec((t_b, C), lambda b, k: (b, 0))
    else:
        out_shape = jax.ShapeDtypeStruct((B, C, 1), x.dtype)
        out_spec = pl.BlockSpec((t_b, C, 1), lambda b, k: (b, 0, 0))

    # Size the VMEM limit from actual usage (double-buffered blocks + weights +
    # scratch) plus headroom, capped well inside physical VMEM on every gen.
    x_block = t_b * C * t_hw * itemsize
    w_bytes = w1.size * w1.dtype.itemsize + w2.size * w2.dtype.itemsize
    o_block = t_b * C * itemsize
    scratch = 2 * t_b * C * lw * 4
    needed = 2 * (x_block + w_bytes + o_block) + scratch
    vmem_limit = int(min(max(needed + needed // 4 + (2 << 20), 8 << 20), 48 << 20))
    vmem_limit = max(vmem_limit, needed + (1 << 20))

    cost = pl.CostEstimate(
        flops=int(B) * (3 * C * HW + 8 * C * Cr),
        transcendentals=int(B) * C,                       # sigmoid
        bytes_accessed=(x_flat.size * itemsize + w_bytes + B * C * itemsize),
    )

    out = pl.pallas_call(
        _make_kernel(HW, t_hw, num_k, chunked, needs_mask, out_2d),
        out_shape=out_shape,
        grid_spec=pltpu.PrefetchScalarGridSpec(
            num_scalar_prefetch=0,
            grid=(num_b, num_k),
            in_specs=[
                pl.BlockSpec((t_b, C, t_hw), lambda b, k: (b, 0, k)),
                pl.BlockSpec((Cr, C), lambda b, k: (0, 0)),   # weights stay resident
                pl.BlockSpec((C, Cr), lambda b, k: (0, 0)),   # weights stay resident
            ],
            out_specs=out_spec,
            scratch_shapes=[
                pltpu.VMEM((t_b, C, lw), jnp.float32),   # running (lane-partial) sum
                pltpu.VMEM((t_b, C, lw), jnp.float32),   # running (lane-partial) max
            ],
        ),
        compiler_params=pltpu.CompilerParams(
            dimension_semantics=("parallel", "arbitrary"),
            vmem_limit_bytes=vmem_limit,
        ),
        cost_estimate=cost,
    )(x_flat, w1, w2)

    return out.reshape(B, C, 1, 1)


def channel_attention_ref(x, w1, w2):
    """Pure-JAX reference mirroring the PyTorch forward."""
    avg = jnp.mean(x, axis=(2, 3))                        # (B, C)
    mx = jnp.max(x, axis=(2, 3))                          # (B, C)

    def mlp(v):  # v: (B, C)
        h = jnp.maximum(v @ w1.T, 0.0)                    # (B, Cr)
        return h @ w2.T                                   # (B, C)

    out = jax.nn.sigmoid(mlp(avg) + mlp(mx))              # (B, C)
    return out[:, :, None, None]                          # (B, C, 1, 1)


if __name__ == "__main__":
    key = jax.random.PRNGKey(0)
    ratio = 8
    configs = [
        # (B, C, H, W, t_b, t_hw)
        (2, 32, 16, 16, None, None),   # batch-blocked, single 256-lane tile (chunked, unmasked)
        (2, 32, 20, 20, 2, 128),       # multi-k + masked ragged tail (400 = 3*128 + 16)
        (2, 32, 10, 10, None, None),   # single tile, HW=100 not a 128-multiple (direct reduce)
        (3, 32, 20, 20, 2, 128),       # partial batch block + (B, C, 1) output fallback
    ]
    for (B, C, H, W, tb, thw) in configs:
        Cr = C // ratio
        kx, k1, k2, key = jax.random.split(key, 4)
        x = jax.random.normal(kx, (B, C, H, W), dtype=jnp.float32)

        # Deterministic init matching nn.Conv2d(C, C//r, 1, bias=False) /
        # nn.Conv2d(C//r, C, 1, bias=False), squeezed over the 1x1 kernel dims.
        bound1 = 1.0 / np.sqrt(C)
        bound2 = 1.0 / np.sqrt(Cr)
        w1 = jax.random.uniform(k1, (Cr, C), jnp.float32, -bound1, bound1)
        w2 = jax.random.uniform(k2, (C, Cr), jnp.float32, -bound2, bound2)

        out = channel_attention(x, w1, w2, t_b=tb, t_hw=thw)
        jax.block_until_ready(out)

        ref = channel_attention_ref(x, w1, w2)
        np.testing.assert_allclose(np.asarray(out), np.asarray(ref), rtol=1e-5, atol=1e-5)

    print("KERNEL_OK")
</pallas_src>

<mosaic_0001>
module attributes {stable_mosaic.version = 11 : i64} {
  func.func @kernel(%arg0: i32, %arg1: i32, %arg2: memref<2x32x256xf32, #tpu.memory_space<vmem>>, %arg3: memref<4x32xf32, #tpu.memory_space<vmem>>, %arg4: memref<32x4xf32, #tpu.memory_space<vmem>>, %arg5: memref<2x32xf32, #tpu.memory_space<vmem>>, %arg6: memref<2x32x128xf32, #tpu.memory_space<vmem>>, %arg7: memref<2x32x128xf32, #tpu.memory_space<vmem>>) attributes {dimension_semantics = [#tpu.dimension_semantics<parallel>, #tpu.dimension_semantics<arbitrary>], iteration_bounds = array<i64: 1, 1>, scalar_prefetch = 0 : i64, scratch_operands = 2 : i64, tpu.core_type = #tpu.core_type<tc>, window_params = [{transform_indices = @transform_0, window_bounds = array<i64: 2, 32, 256>}, {pipeline_mode = #tpu.pipeline_mode<synchronous>, transform_indices = @transform_1, window_bounds = array<i64: 4, 32>}, {pipeline_mode = #tpu.pipeline_mode<synchronous>, transform_indices = @transform_2, window_bounds = array<i64: 32, 4>}, {transform_indices = @transform_3, window_bounds = array<i64: 2, 32>}]} {
    %c0_i32 = arith.constant 0 : i32
    %0 = arith.cmpi eq, %arg1, %c0_i32 : i32
    %1 = arith.extui %0 : i1 to i32
    %c0_i32_0 = arith.constant 0 : i32
    %2 = arith.cmpi ne, %1, %c0_i32_0 : i32
    scf.if %2 {
      %cst = arith.constant 0.000000e+00 : f32
      %20 = vector.broadcast %cst : f32 to vector<2x32x128xf32>
      %c0_31 = arith.constant 0 : index
      %c0_32 = arith.constant 0 : index
      %c0_33 = arith.constant 0 : index
      %21 = vector.load %arg6[%c0_31, %c0_32, %c0_33] : memref<2x32x128xf32, #tpu.memory_space<vmem>>, vector<2x32x128xf32>
      tpu.vector_store %arg6[%c0_31, %c0_32, %c0_33], %20 {strides = array<i32>} : memref<2x32x128xf32, #tpu.memory_space<vmem>>, vector<2x32x128xf32>,
      %cst_34 = arith.constant 0xFF800000 : f32
      %22 = vector.broadcast %cst_34 : f32 to vector<2x32x128xf32>
      %c0_35 = arith.constant 0 : index
      %c0_36 = arith.constant 0 : index
      %c0_37 = arith.constant 0 : index
      %23 = vector.load %arg7[%c0_35, %c0_36, %c0_37] : memref<2x32x128xf32, #tpu.memory_space<vmem>>, vector<2x32x128xf32>
      tpu.vector_store %arg7[%c0_35, %c0_36, %c0_37], %22 {strides = array<i32>} : memref<2x32x128xf32, #tpu.memory_space<vmem>>, vector<2x32x128xf32>,
    } else {
    }
    %c0 = arith.constant 0 : index
    %c0_1 = arith.constant 0 : index
    %c0_2 = arith.constant 0 : index
    %3 = vector.load %arg2[%c0, %c0_1, %c0_2] : memref<2x32x256xf32, #tpu.memory_space<vmem>>, vector<2x32x128xf32>
    %c0_3 = arith.constant 0 : index
    %c0_4 = arith.constant 0 : index
    %c0_5 = arith.constant 0 : index
    %4 = vector.load %arg6[%c0_3, %c0_4, %c0_5] : memref<2x32x128xf32, #tpu.memory_space<vmem>>, vector<2x32x128xf32>
    %5 = arith.addf %4, %3 : vector<2x32x128xf32>
    %c0_6 = arith.constant 0 : index
    %c0_7 = arith.constant 0 : index
    %c0_8 = arith.constant 0 : index
    %6 = vector.load %arg6[%c0_6, %c0_7, %c0_8] : memref<2x32x128xf32, #tpu.memory_space<vmem>>, vector<2x32x128xf32>
    tpu.vector_store %arg6[%c0_6, %c0_7, %c0_8], %5 {strides = array<i32>} : memref<2x32x128xf32, #tpu.memory_space<vmem>>, vector<2x32x128xf32>,
    %c0_9 = arith.constant 0 : index
    %c0_10 = arith.constant 0 : index
    %c0_11 = arith.constant 0 : index
    %7 = vector.load %arg7[%c0_9, %c0_10, %c0_11] : memref<2x32x128xf32, #tpu.memory_space<vmem>>, vector<2x32x128xf32>
    %8 = arith.maximumf %7, %3 : vector<2x32x128xf32>
    %c0_12 = arith.constant 0 : index
    %c0_13 = arith.constant 0 : index
    %c0_14 = arith.constant 0 : index
    %9 = vector.load %arg7[%c0_12, %c0_13, %c0_14] : memref<2x32x128xf32, #tpu.memory_space<vmem>>, vector<2x32x128xf32>
    tpu.vector_store %arg7[%c0_12, %c0_13, %c0_14], %8 {strides = array<i32>} : memref<2x32x128xf32, #tpu.memory_space<vmem>>, vector<2x32x128xf32>,
    %c0_15 = arith.constant 0 : index
    %c0_16 = arith.constant 0 : index
    %c128 = arith.constant 128 : index
    %10 = vector.load %arg2[%c0_15, %c0_16, %c128] : memref<2x32x256xf32, #tpu.memory_space<vmem>>, vector<2x32x128xf32>
    %c0_17 = arith.constant 0 : index
    %c0_18 = arith.constant 0 : index
    %c0_19 = arith.constant 0 : index
    %11 = vector.load %arg6[%c0_17, %c0_18, %c0_19] : memref<2x32x128xf32, #tpu.memory_space<vmem>>, vector<2x32x128xf32>
    %12 = arith.addf %11, %10 : vector<2x32x128xf32>
    %c0_20 = arith.constant 0 : index
    %c0_21 = arith.constant 0 : index
    %c0_22 = arith.constant 0 : index
    %13 = vector.load %arg6[%c0_20, %c0_21, %c0_22] : memref<2x32x128xf32, #tpu.memory_space<vmem>>, vector<2x32x128xf32>
    tpu.vector_store %arg6[%c0_20, %c0_21, %c0_22], %12 {strides = array<i32>} : memref<2x32x128xf32, #tpu.memory_space<vmem>>, vector<2x32x128xf32>,
    %c0_23 = arith.constant 0 : index
    %c0_24 = arith.constant 0 : index
    %c0_25 = arith.constant 0 : index
    %14 = vector.load %arg7[%c0_23, %c0_24, %c0_25] : memref<2x32x128xf32, #tpu.memory_space<vmem>>, vector<2x32x128xf32>
    %15 = arith.maximumf %14, %10 : vector<2x32x128xf32>
    %c0_26 = arith.constant 0 : index
    %c0_27 = arith.constant 0 : index
    %c0_28 = arith.constant 0 : index
    %16 = vector.load %arg7[%c0_26, %c0_27, %c0_28] : memref<2x32x128xf32, #tpu.memory_space<vmem>>, vector<2x32x128xf32>
    tpu.vector_store %arg7[%c0_26, %c0_27, %c0_28], %15 {strides = array<i32>} : memref<2x32x128xf32, #tpu.memory_space<vmem>>, vector<2x32x128xf32>,
    %c0_i32_29 = arith.constant 0 : i32
    %17 = arith.cmpi eq, %arg1, %c0_i32_29 : i32
    %18 = arith.extui %17 : i1 to i32
    %c0_i32_30 = arith.constant 0 : i32
    %19 = arith.cmpi ne, %18, %c0_i32_30 : i32
    scf.if %19 {
      %c0_31 = arith.constant 0 : index
      %c0_32 = arith.constant 0 : index
      %c0_33 = arith.constant 0 : index
      %20 = vector.load %arg6[%c0_31, %c0_32, %c0_33] : memref<2x32x128xf32, #tpu.memory_space<vmem>>, vector<2x32x128xf32>
      %cst = arith.constant dense<0.000000e+00> : vector<2x32xf32>
      %21 = vector.multi_reduction <add>, %20, %cst [2] : vector<2x32x128xf32> to vector<2x32xf32>
      %cst_34 = arith.constant 3.906250e-03 : f32
      %22 = vector.broadcast %cst_34 : f32 to vector<2x32xf32>
      %23 = arith.mulf %21, %22 : vector<2x32xf32>
      %c0_35 = arith.constant 0 : index
      %c0_36 = arith.constant 0 : index
      %c0_37 = arith.constant 0 : index
      %24 = vector.load %arg7[%c0_35, %c0_36, %c0_37] : memref<2x32x128xf32, #tpu.memory_space<vmem>>, vector<2x32x128xf32>
      %cst_38 = arith.constant dense<0xFF800000> : vector<2x32xf32>
      %25 = vector.multi_reduction <maximumf>, %24, %cst_38 [2] : vector<2x32x128xf32> to vector<2x32xf32>
      %c0_39 = arith.constant 0 : index
      %c0_40 = arith.constant 0 : index
      %26 = vector.load %arg3[%c0_39, %c0_40] : memref<4x32xf32, #tpu.memory_space<vmem>>, vector<4x32xf32>
      %c0_41 = arith.constant 0 : index
      %c0_42 = arith.constant 0 : index
      %27 = vector.load %arg4[%c0_41, %c0_42] : memref<32x4xf32, #tpu.memory_space<vmem>>, vector<32x4xf32>
      %cst_43 = arith.constant dense<0.000000e+00> : vector<2x4xf32>
      %28 = tpu.matmul %23, %26, %cst_43 {dimension_numbers = #tpu.dot_dimension_numbers<[1], [1], [0], [0], [0, 0, 1, 0], [], []>} : vector<2x32xf32>, vector<4x32xf32>, vector<2x4xf32> -> vector<2x4xf32>
      %cst_44 = arith.constant 0.000000e+00 : f32
      %29 = vector.broadcast %cst_44 : f32 to vector<2x4xf32>
      %30 = arith.maximumf %28, %29 : vector<2x4xf32>
      %cst_45 = arith.constant dense<0.000000e+00> : vector<2x4xf32>
      %31 = tpu.matmul %25, %26, %cst_45 {dimension_numbers = #tpu.dot_dimension_numbers<[1], [1], [0], [0], [0, 0, 1, 0], [], []>} : vector<2x32xf32>, vector<4x32xf32>, vector<2x4xf32> -> vector<2x4xf32>
      %cst_46 = arith.constant 0.000000e+00 : f32
      %32 = vector.broadcast %cst_46 : f32 to vector<2x4xf32>
      %33 = arith.maximumf %31, %32 : vector<2x4xf32>
      %34 = arith.addf %30, %33 : vector<2x4xf32>
      %cst_47 = arith.constant dense<0.000000e+00> : vector<2x32xf32>
      %35 = tpu.matmul %34, %27, %cst_47 {dimension_numbers = #tpu.dot_dimension_numbers<[1], [1], [0], [0], [0, 0, 1, 0], [], []>} : vector<2x4xf32>, vector<32x4xf32>, vector<2x32xf32> -> vector<2x32xf32>
      %36 = arith.negf %35 : vector<2x32xf32>
      %37 = math.exp %36 : vector<2x32xf32>
      %cst_48 = arith.constant 1.000000e+00 : f32
      %38 = vector.broadcast %cst_48 : f32 to vector<2x32xf32>
      %39 = arith.addf %38, %37 : vector<2x32xf32>
      %40 = arith.divf %38, %39 : vector<2x32xf32>
      %c0_49 = arith.constant 0 : index
      %c0_50 = arith.constant 0 : index
      %41 = vector.load %arg5[%c0_49, %c0_50] : memref<2x32xf32, #tpu.memory_space<vmem>>, vector<2x32xf32>
      tpu.vector_store %arg5[%c0_49, %c0_50], %40 {strides = array<i32>} : memref<2x32xf32, #tpu.memory_space<vmem>>, vector<2x32xf32>,
    } else {
    }
    return
  }
  func.func @transform_0(%arg0: i32, %arg1: i32) -> (i32, i32, i32) {
    %c0_i32 = arith.constant 0 : i32
    %c0_i32_0 = arith.constant 0 : i32
    return %arg0, %c0_i32, %arg1 : i32, i32, i32
  }
  func.func @transform_1(%arg0: i32, %arg1: i32) -> (i32, i32) {
    %c0_i32 = arith.constant 0 : i32
    %c0_i32_0 = arith.constant 0 : i32
    %c0_i32_1 = arith.constant 0 : i32
    return %c0_i32, %c0_i32_0 : i32, i32
  }
  func.func @transform_2(%arg0: i32, %arg1: i32) -> (i32, i32) {
    %c0_i32 = arith.constant 0 : i32
    %c0_i32_0 = arith.constant 0 : i32
    %c0_i32_1 = arith.constant 0 : i32
    return %c0_i32, %c0_i32_0 : i32, i32
  }
  func.func @transform_3(%arg0: i32, %arg1: i32) -> (i32, i32) {
    %c0_i32 = arith.constant 0 : i32
    %c0_i32_0 = arith.constant 0 : i32
    return %arg0, %c0_i32 : i32, i32
  }
}

</mosaic_0001>

<bundles_post_ra>
// kernel: tpu_custom_call.1
= control target key start
LH: loop header
LB: loop body
LE: loop exit
PB: predicated region body
PF: predicated region fallthrough
CT: control target
= control target key end

     0   :  { %8 = vsyncpa [#allocation5], 0  ;;  %s785_s0 = inlined_call_operand.hbm [shape: f32[2,32,256], index: 0, kind: input, shape index: {}]   ;;  %s786_s1 = inlined_call_operand.vmem [shape: f32[4,32], index: 1, kind: input, shape index: {}]   ;;  %s787_s2 = inlined_call_operand.vmem [shape: f32[32,4], index: 2, kind: input, shape index: {}]   ;;  %s788_s3 = inlined_call_operand.hbm [shape: f32[2,32], index: 3, kind: output, shape index: {}]  }
   0x1   :  { %9 = vsyncpa [#allocation6], 0  ;;  %s695_s12 = smov [#allocation4]   ;;  %s647_s16 = scalar_lea.hbm %s785_s0, 2048 }
   0x2   :  { %s15_s13 = sshll.u32 %s695_s12, 4  ;;  %p648_p0 = scmp.ne.s32.totalorder %s785_s0, %s647_s16  ;;  %s16_s13 = int_to_ptr.vmem [resolvable:$true] %s15_s13 }
   0x3   :  { %p651_p1 = scmp.lt.u32.totalorder %s647_s16, %s785_s0 }
   0x5   :  { %p653_p2 = pnand %p651_p1, %p648_p0 }
   0x7   :  { %656 = shalt.err (!%p653_p2)
}
   0x8   :  { %s657_s21 = scalar_lea.vmem %s16_s13, 2048  ;;  %p662_p4 = scmp.lt.s32.totalorder %s16_s13, %s16_s13 }
   0x9   :  { %p658_p3 = scmp.ne.s32.totalorder %s16_s13, %s657_s21  ;;  %p663_p5 = scmp.lt.s32.totalorder %s657_s21, %s657_s21 }
   0xb   :  { %p664_p6 = por %p663_p5, %p662_p4 }
   0xd   :  { %p665_p7 = pnand %p664_p6, %p658_p3 }
   0xf   :  { %668 = shalt.err (!%p665_p7)
}
  0x10   :  { %s696_s22 = smov 256   ;;  %s697_s23 = smov 16  }
  0x11   :  { %21 = dma.hbm_to_vmem [thread:$0]  %s785_s0, 2048, %s16_s13, [#allocation5], %s696_s22, %s696_s22, %s697_s23  }
  0x12   :  { %691 = dma.done.wait [#allocation5], 2048  }
  0x13   :  { %692 = vsyncadd [#allocation5], 4294965248  ;;  %v53_v0 = vld [vmem:[#allocation4 + $0x40] sm:$0xff]  ;;  %v109_v1 = vld [vmem:[#allocation4 + $0x48] sm:$0xff]  ;;  %v698_v32 = vmov 0.0   ;;  %vm281_vm0 = vcmask 261120   ;;  %v233_v34 = vlaneseq }
  0x14   :  { %v49_v2 = vld [vmem:[#allocation4] sm:$0xff]  ;;  %v125_v3 = vadd.f32 %v109_v1, %v53_v0  ;;  %v105_v4 = vld [vmem:[#allocation4 + $0x8] sm:$0xff]  ;;  %v54_v5 = vld [vmem:[#allocation4 + $0x50] sm:$0xff]  ;;  %v149_v27 = vmax.f32 %v53_v0, %v109_v1  ;;  %607 = vmatprep.subr.mxu1 %v698_v32  ;;  %vm699_vm1 = vmmov 0   ;;  %vm244_vm2 = vcmask 130112   ;;  %s701_s7 = smov [#allocation7]  }
  0x15   :  { %v110_v6 = vld [vmem:[#allocation4 + $0x58] sm:$0xff]  ;;  %v121_v7 = vadd.f32 %v105_v4, %v49_v2  ;;  %v50_v8 = vld [vmem:[#allocation4 + $0x10] sm:$0xff]  ;;  %v55_v12 = vld [vmem:[#allocation4 + $0x60] sm:$0xff]  ;;  %v145_v25 = vmax.f32 %v49_v2, %v105_v4  ;;  %609 = vmatprep.mubr.msk.f32.mxu1 %vm699_vm1, %v698_v32  ;;  %625 = vmatprep.mubr.msk.f32.mxu0 %vm699_vm1, %v698_v32  ;;  %v234_v36 = vand.u32 127, %v233_v34  ;;  %v236_v41 = vshrl.u32 %v233_v34, 7 }
  0x16   :  { %v106_v9 = vld [vmem:[#allocation4 + $0x18] sm:$0xff]  ;;  %180 = vadd.xlane.f32.xlu1 %v125_v3  ;;  %v126_v10 = vadd.f32 %v110_v6, %v54_v5  ;;  %v111_v13 = vld [vmem:[#allocation4 + $0x68] sm:$0xff]  ;;  %v51_v14 = vld [vmem:[#allocation4 + $0x20] sm:$0xff]  ;;  %v150_v26 = vmax.f32 %v54_v5, %v110_v6  ;;  %vm251_vm3 = vcmask 195712   ;;  %vm258_vm4 = vcmask 261312  }
  0x17   :  { %172 = vadd.xlane.f32.xlu0 %v121_v7  ;;  %v122_v11 = vadd.f32 %v106_v9, %v50_v8  ;;  %v107_v15 = vld [vmem:[#allocation4 + $0x28] sm:$0xff]  ;;  %v127_v16 = vadd.f32 %v111_v13, %v55_v12  ;;  %v56_v18 = vld [vmem:[#allocation4 + $0x70] sm:$0xff]  ;;  %v112_v19 = vld [vmem:[#allocation4 + $0x78] sm:$0xff]  ;;  %v146_v24 = vmax.f32 %v50_v8, %v106_v9  ;;  %v151_v28 = vmax.f32 %v55_v12, %v111_v13 }
  0x18   :  { %v123_v17 = vadd.f32 %v107_v15, %v51_v14  ;;  %v52_v20 = vld [vmem:[#allocation4 + $0x30] sm:$0xff]  ;;  %v108_v21 = vld [vmem:[#allocation4 + $0x38] sm:$0xff]  ;;  %v128_v22 = vadd.f32 %v112_v19, %v56_v18  ;;  %v147_v29 = vmax.f32 %v51_v14, %v107_v15  ;;  %v152_v30 = vmax.f32 %v56_v18, %v112_v19  ;;  %v220_v33 = vld [vmem:[%s786_s1] sm:$0xf] }
  0x19   :  { %v124_v23 = vadd.f32 %v108_v21, %v52_v20  ;;  %v148_v31 = vmax.f32 %v52_v20, %v108_v21  ;;  %608 = vmatpush3.xpose.msk.msra.mxu1 %vm281_vm0, %v220_v33  ;;  %v239_v38 = vadd.s32 4294967288, %v234_v36  ;;  %v246_v40 = vadd.s32 4294967280, %v234_v36  ;;  %v221_v34 = vld [vmem:[%s787_s2] sm:$0xff] }
  0x1a   :  { %182 = vadd.xlane.f32.xlu1 %v126_v10  ;;  %612 = vmatprep.subr.mxu1 %v698_v32  ;;  %v253_v45 = vadd.s32 4294967272, %v234_v36  ;;  %v237_v49 = vsub.s32 %v234_v36, %v236_v41  ;;  %vm279_vm5 = vcmask 1041409   ;;  %vm479_vm6 = vcmask 31744  }
  0x1b   :  { %174 = vadd.xlane.f32.xlu0 %v122_v11  ;;  %v242_v43 = vsub.s32 %v239_v38, %v236_v41  ;;  %v249_v47 = vsub.s32 %v246_v40, %v236_v41  ;;  %v700_v36 = vmov 0.0|0.0   ;;  %vm630_vm7 = vmpackc.low %vm479_vm6, %vm479_vm6  ;;  %v223_v38 = vld [vmem:[%s787_s2 + $0x10] sm:$0xff]  ;;  %vm571_vm8 = vcmask 254976  }
  0x1c   :  { %v256_v56 = vsub.s32 %v253_v45, %v236_v41  ;;  %628 = vmatprep.subr.bf16.mxu0 %v700_v36 }
  0x1e   :  { %184 = vadd.xlane.f32.xlu1 %v127_v16 }
  0x1f   :  { %176 = vadd.xlane.f32.xlu0 %v123_v17 }
  0x22   :  { %186 = vadd.xlane.f32.xlu1 %v128_v22 }
  0x23   :  { %178 = vadd.xlane.f32.xlu0 %v124_v23 }
  0x26   :  { %206 = vmax.xlane.f32.xlu1 %v146_v24 }
  0x27   :  { %204 = vmax.xlane.f32.xlu0 %v145_v25 }
  0x2a   :  { %214 = vmax.xlane.f32.xlu1 %v150_v26 }
  0x2b   :  { %212 = vmax.xlane.f32.xlu0 %v149_v27 }
  0x2e   :  { %216 = vmax.xlane.f32.xlu1 %v151_v28 }
  0x2f   :  { %208 = vmax.xlane.f32.xlu0 %v147_v29 }
  0x32   :  { %218 = vmax.xlane.f32.xlu1 %v152_v30 }
  0x33   :  { %210 = vmax.xlane.f32.xlu0 %v148_v31 }
  0xa3   :  { %v181_v35 = vpop.xlane.xlu1 %180 }
  0xa4   :  { %v173_v37 = vpop.xlane.xlu0 %172  ;;  %v192_v50 = vmul.f32 0.00390625, %v181_v35  ;;  %v222_v35 = vld [vmem:[%s787_s2 + $0x8] sm:$0xff] }
  0xa5   :  { %v188_v53 = vmul.f32 0.00390625, %v173_v37  ;;  %v629_v37 = vpack.c.bf16 %v222_v35, %v221_v34 }
  0xa6   :  { %v263_v60 = vrot.slane %v192_v50, %v237_v49 }
  0xa7   :  { %v183_v39 = vpop.xlane.xlu1 %182  ;;  %v238_v0 = vrot.slane %v188_v53, %v237_v49  ;;  %631 = vmatpush3.bf16.xpose.msk.msra.mxu0 %vm630_vm7, %v629_v37 }
  0xa8   :  { %v175_v42 = vpop.xlane.xlu0 %174  ;;  %v193_v44 = vmul.f32 0.00390625, %v183_v39  ;;  %632 = vmatprep.subr.bf16.mxu0 %v700_v36  ;;  %v224_v39 = vld [vmem:[%s787_s2 + $0x18] sm:$0xff]  ;;  %s579_s2 = sshll.u32 %s701_s7, 4  ;;  %s580_s2 = int_to_ptr.vmem [resolvable:$true] %s579_s2 }
  0xa9   :  { %v189_v46 = vmul.f32 0.00390625, %v175_v42  ;;  %v633_v40 = vpack.c.bf16 %v224_v39, %v223_v38  ;;  %s669_s8 = scalar_lea.vmem %s580_s2, 32  ;;  %p674_p9 = scmp.lt.s32.totalorder %s580_s2, %s580_s2 }
  0xaa   :  { %v267_v55 = vrot.slane %v193_v44, %v242_v43  ;;  %p670_p8 = scmp.ne.s32.totalorder %s580_s2, %s669_s8  ;;  %p675_p10 = scmp.lt.s32.totalorder %s669_s8, %s669_s8 }
  0xab   :  { %v185_v48 = vpop.xlane.xlu1 %184  ;;  %v243_v57 = vrot.slane %v189_v46, %v242_v43 }
  0xac   :  { %v194_v51 = vmul.f32 0.00390625, %v185_v48  ;;  %v177_v52 = vpop.xlane.xlu0 %176  ;;  %v268_v2 = vsel %vm244_vm2, %v267_v55, %v263_v60  ;;  %p676_p11 = por %p675_p10, %p674_p9 }
  0xad   :  { %v190_v54 = vmul.f32 0.00390625, %v177_v52  ;;  %v245_v4 = vsel %vm244_vm2, %v243_v57, %v238_v0 }
  0xae   :  { %v272_v58 = vrot.slane %v194_v51, %v249_v47  ;;  %p677_p12 = pnand %p676_p11, %p670_p8 }
  0xaf   :  { %v187_v59 = vpop.xlane.xlu1 %186  ;;  %v250_v61 = vrot.slane %v190_v54, %v249_v47  ;;  %635 = vmatpush3.bf16.xpose.msk.msra.mxu0 %vm630_vm7, %v633_v40 }
  0xb0   :  { %v195_v62 = vmul.f32 0.00390625, %v187_v59  ;;  %v179_v63 = vpop.xlane.xlu0 %178  ;;  %v273_v5 = vsel %vm251_vm3, %v272_v58, %v268_v2 }
  0xb1   :  { %v191_v1 = vmul.f32 0.00390625, %v179_v63  ;;  %v252_v8 = vsel %vm251_vm3, %v250_v61, %v245_v4 }
  0xb2   :  { %v277_v3 = vrot.slane %v195_v62, %v256_v56 }
  0xb3   :  { %v257_v6 = vrot.slane %v191_v1, %v256_v56  ;;  %v207_v7 = vpop.xlane.xlu1 %206 }
  0xb4   :  { %v205_v9 = vpop.xlane.xlu0 %204  ;;  %v278_v10 = vsel %vm258_vm4, %v277_v3, %v273_v5  ;;  %v373_v19 = vrot.slane %v207_v7, %v242_v43 }
  0xb5   :  { %v259_v11 = vsel %vm258_vm4, %v257_v6, %v252_v8  ;;  %v369_v20 = vrot.slane %v205_v9, %v237_v49 }
  0xb6   :  { %v280_v12 = vsel %vm279_vm5, %v278_v10, %v259_v11 }
  0xb7   :  { %610 = vmatmul.mubr.msk.f32.vlgmr.msra.gmra.mrb[0].mxu1 %vm281_vm0, %v280_v12  ;;  %v215_v13 = vpop.xlane.xlu1 %214  ;;  %v374_v27 = vsel %vm244_vm2, %v373_v19, %v369_v20 }
  0xb8   :  { %v213_v14 = vpop.xlane.xlu0 %212  ;;  %613 = vmatpush3.xpose.msk.msra.mxu1 %vm281_vm0, %v220_v33  ;;  %614 = vmatprep.mubr.msk.f32.mxu1 %vm699_vm1, %v698_v32  ;;  %v392_v16 = vrot.slane %v215_v13, %v242_v43 }
  0xb9   :  { %v388_v17 = vrot.slane %v213_v14, %v237_v49 }
  0xbb   :  { %v217_v15 = vpop.xlane.xlu1 %216  ;;  %v393_v24 = vsel %vm244_vm2, %v392_v16, %v388_v17 }
  0xbc   :  { %v209_v18 = vpop.xlane.xlu0 %208  ;;  %v397_v21 = vrot.slane %v217_v15, %v249_v47 }
  0xbd   :  { %v378_v22 = vrot.slane %v209_v18, %v249_v47 }
  0xbe   :  { %v398_v28 = vsel %vm251_vm3, %v397_v21, %v393_v24 }
  0xbf   :  { %v219_v23 = vpop.xlane.xlu1 %218  ;;  %v379_v30 = vsel %vm251_vm3, %v378_v22, %v374_v27 }
  0xc0   :  { %v402_v25 = vrot.slane %v219_v23, %v256_v56  ;;  %v211_v26 = vpop.xlane.xlu0 %210 }
  0xc1   :  { %v383_v29 = vrot.slane %v211_v26, %v256_v56 }
  0xc2   :  { %v403_v31 = vsel %vm258_vm4, %v402_v25, %v398_v28 }
  0xc3   :  { %v384_v32 = vsel %vm258_vm4, %v383_v29, %v379_v30 }
  0xc4   :  { %v404_v33 = vsel %vm279_vm5, %v403_v31, %v384_v32 }
  0xc5   :  { %615 = vmatmul.mubr.msk.f32.vlgmr.msra.gmra.mrb[2].mxu1 %vm281_vm0, %v404_v33 }
 0x18a   :  { %v353_v41 = vpop.f32.mrb[0].mxu1 }
 0x18b   :  { %v611_v42 = vpop.f32.mrb[1].mxu1  ;;  %v357_v44 = vmax.f32 %v353_v41, 0.0 }
 0x198   :  { %v473_v43 = vpop.f32.mrb[2].mxu1 }
 0x199   :  { %v477_v45 = vmax.f32 %v473_v43, 0.0  ;;  %v616_v46 = vpop.f32.mrb[3].mxu1 }
 0x19b   :  { %v478_v47 = vadd.f32 %v477_v45, %v357_v44 }
 0x19d   :  { %626 = vmatmul.mubr.msk.f32.vlgmr.msra.gmra.mrb[0].mxu0 %vm479_vm6, %v478_v47 }
 0x270   :  { %v561_v48 = vpop.f32.mrb[0].mxu0 }
 0x271   :  { %v597_v49 = vmul.f32 -1.442695, %v561_v48  ;;  %v627_v50 = vpop.f32.mrb[1].mxu0 }
 0x273   :  { %643 = vpow2.f32 %v597_v49 }
 0x27d   :  { %v644_v51 = vpop.eup %643 }
 0x27e   :  { %v568_v52 = vadd.f32 1.0, %v644_v51 }
 0x280   :  { %645 = vrcp.f32 %v568_v52 }
 0x28a   :  { %v646_v53 = vpop.eup %645 }
 0x28b   :  { %572 = vst.msk [vmem:[#allocation7] sm:$0x3] %vm571_vm8, %v646_v53 }
 0x28c   :  { %680 = shalt.err (!%p677_p12)
}
 0x28d   :  { %s681_s11 = scalar_lea.hbm %s788_s3, 32 }
 0x28e   :  { %p682_p13 = scmp.ne.s32.totalorder %s788_s3, %s681_s11  ;;  %p685_p0 = scmp.lt.u32.totalorder %s681_s11, %s788_s3 }
 0x290   :  { %p687_p1 = pnand %p685_p0, %p682_p13 }
 0x292   :  { %690 = shalt.err (!%p687_p1)
}
 0x293   :  { %582 = dma.vmem_to_hbm [thread:$0]  %s580_s2, 32, %s788_s3, [#allocation6]  }
 0x294   :  { %693 = dma.done.wait [#allocation6], 32  }
 0x295   :  { %694 = vsyncadd [#allocation6], 4294967264 }
 0x296   :  { %586 = vsyncpa [#allocation5], 1 }
 0x297   :  { %587 = vsyncpa [#allocation6], 1 }

</bundles_post_ra>
